<compile_context>
chip_gen: v6e
topology: v6e:2x2x1
jax: 0.10.0
libtpu: 0.0.40
codegen_flags: <defaults>
</compile_context>

<pallas_src>
import jax
import jax.numpy as jnp
from jax.experimental import pallas as pl
from jax.experimental.pallas import tpu as pltpu


# ----------------------------- fused Pallas kernel -----------------------------

def _make_fused_kernel(inv_hw):
    """conv-as-matmul + ReLU + concat pooling (avg/max) + Linear, one batch element per step.

    p:  (1, HW, K)     bf16 im2col patches for this batch element (K = 9*Cin, unpadded)
    w:  (K, Cout)      bf16 conv weight
    wc: (2*Cout, N)    bf16 classifier weight, rows ordered [avg-half ; max-half]
    o:  (1, 1, N)      f32 logits for this batch element
    """
    def kernel(p_ref, w_ref, wc_ref, o_ref):
        # MXU matmul, f32 accumulation; ReLU on the f32 accumulator (VPU).
        feat = jnp.dot(p_ref[0], w_ref[...], preferred_element_type=jnp.float32)
        feat = jnp.maximum(feat, 0.0)                                # (HW, Cout) f32

        # concat pooling: single sublane reductions, avg = sum * const (no div).
        avg = jnp.sum(feat, axis=0, keepdims=True) * inv_hw          # (1, Cout) f32
        mxv = jnp.max(feat, axis=0, keepdims=True)                   # (1, Cout) f32
        pooled = jnp.concatenate([avg, mxv], axis=-1).astype(jnp.bfloat16)  # (1, 2*Cout)

        # single classifier matmul (one MXU push instead of two).
        out = jnp.dot(pooled, wc_ref[...], preferred_element_type=jnp.float32)  # (1, N)
        o_ref[0] = out.astype(o_ref.dtype)
    return kernel


# ------------------------------ JAX wrapper --------------------------------

def _im2col_3x3_nhwc(x_nchw):
    """(B, Cin, H, W) -> (B, H*W, 9*Cin) patches.

    NHWC path: single transpose of the (small) input, spatial pad, 9 lane-contiguous
    slices concatenated on the last (channel) axis. Patch index = (ky*3 + kx)*Cin + cin.
    """
    B, C, H, W = x_nchw.shape
    x = jnp.transpose(x_nchw, (0, 2, 3, 1))                         # (B, H, W, C)
    xp = jnp.pad(x, ((0, 0), (1, 1), (1, 1), (0, 0)))
    slices = [xp[:, ky:ky + H, kx:kx + W, :]
              for ky in range(3) for kx in range(3)]                # 9 x (B, H, W, C)
    patches = jnp.concatenate(slices, axis=-1)                      # (B, H, W, 9*C)
    return patches.reshape(B, H * W, 9 * C)


def concat_model_forward(x_nchw, conv_w, fc_w):
    """Forward pass of ConcatModel (synthetic conv+ReLU backbone).

    x_nchw:  (B, Cin, H, W) float32
    conv_w:  (Cout, Cin, 3, 3) encoder conv weight
    fc_w:    (num_classes, 2*Cout) final linear weight (PyTorch layout, no bias)
    returns: (B, num_classes) float32
    """
    B, Cin, H, W = x_nchw.shape
    Cout = conv_w.shape[0]
    num_classes = fc_w.shape[0]
    HW = H * W
    K = Cin * 9                                                      # real contraction, no pad

    # --- host prep (cheap): im2col patches + bf16 MXU operands, no K padding ---
    # TODO(synk): im2col could be moved into the kernel (DMA the ~10 KiB padded NHWC input
    # and build patches in VMEM) to drop the 9x HBM expansion; kept host-side for robustness.
    patches = _im2col_3x3_nhwc(x_nchw).astype(jnp.bfloat16)          # (B, HW, K)

    # conv weight with matching (ky*3+kx)*Cin + cin ordering.
    w_mat = jnp.transpose(conv_w, (2, 3, 1, 0)).reshape(K, Cout).astype(jnp.bfloat16)

    # classifier (PyTorch (out, in) layout) -> (2*Cout, N); rows [0:Cout] hit the avg half,
    # rows [Cout:] hit the max half, matching the in-kernel [avg | max] concat.
    w_cls = fc_w.T.astype(jnp.bfloat16)                              # (2*Cout, N)

    kernel = _make_fused_kernel(1.0 / float(HW))

    flops = (2 * B * HW * K * Cout            # conv matmul
             + 3 * B * HW * Cout              # relu + sum + max
             + 2 * B * (2 * Cout) * num_classes)
    bytes_accessed = (patches.size * 2 + w_mat.size * 2
                      + w_cls.size * 2 + B * num_classes * 4)

    logits = pl.pallas_call(
        kernel,
        out_shape=jax.ShapeDtypeStruct((B, 1, num_classes), jnp.float32),
        grid=(B,),
        in_specs=[pl.BlockSpec((1, HW, K), lambda b: (b, 0, 0)),
                  pl.BlockSpec((K, Cout), lambda b: (0, 0)),
                  pl.BlockSpec((2 * Cout, num_classes), lambda b: (0, 0))],
        out_specs=pl.BlockSpec((1, 1, num_classes), lambda b: (b, 0, 0)),
        compiler_params=pltpu.CompilerParams(
            dimension_semantics=("parallel",)),
        cost_estimate=pl.CostEstimate(flops=flops, transcendentals=0,
                                      bytes_accessed=bytes_accessed),
    )(patches, w_mat, w_cls)

    return logits.reshape(B, num_classes)


# --------------------------------- main -------------------------------------

if __name__ == "__main__":
    B, Cin, H, W = 2, 4, 16, 16
    Cout = 32                 # synthetic backbone feature width
    num_classes = 6

    key = jax.random.PRNGKey(0)
    k_x, k_conv, k_fc = jax.random.split(key, 3)

    x = jax.random.normal(k_x, (B, Cin, H, W), dtype=jnp.float32)
    conv_w = 0.1 * jax.random.normal(k_conv, (Cout, Cin, 3, 3), dtype=jnp.float32)
    fc_w = 0.1 * jax.random.normal(k_fc, (num_classes, 2 * Cout), dtype=jnp.float32)

    out = concat_model_forward(x, conv_w, fc_w)
    out = jax.block_until_ready(out)

    assert out.shape == (B, num_classes), out.shape
    # TODO(synk): real backbone (resnet/efficientnet stack) is replaced by a single
    # conv+ReLU stand-in; pooling order fixed to [avg, max] (a weight-row permutation).
    print("KERNEL_OK")
</pallas_src>

<mosaic_0001>
module attributes {stable_mosaic.version = 11 : i64} {
  func.func @kernel(%arg0: i32, %arg1: memref<1x256x36xbf16, #tpu.memory_space<vmem>>, %arg2: memref<36x32xbf16, #tpu.memory_space<vmem>>, %arg3: memref<64x6xbf16, #tpu.memory_space<vmem>>, %arg4: memref<1x1x6xf32, #tpu.memory_space<vmem>>) attributes {dimension_semantics = [#tpu.dimension_semantics<parallel>], iteration_bounds = array<i64: 2>, scalar_prefetch = 0 : i64, scratch_operands = 0 : i64, tpu.core_type = #tpu.core_type<tc>, window_params = [{transform_indices = @transform_0, window_bounds = array<i64: 1, 256, 36>}, {pipeline_mode = #tpu.pipeline_mode<synchronous>, transform_indices = @transform_1, window_bounds = array<i64: 36, 32>}, {pipeline_mode = #tpu.pipeline_mode<synchronous>, transform_indices = @transform_2, window_bounds = array<i64: 64, 6>}, {transform_indices = @transform_3, window_bounds = array<i64: 1, 1, 6>}]} {
    %c0 = arith.constant 0 : index
    %c0_0 = arith.constant 0 : index
    %c0_1 = arith.constant 0 : index
    %0 = vector.load %arg1[%c0, %c0_0, %c0_1] : memref<1x256x36xbf16, #tpu.memory_space<vmem>>, vector<1x256x36xbf16>
    %1 = vector.shape_cast %0 : vector<1x256x36xbf16> to vector<256x36xbf16>
    %c0_2 = arith.constant 0 : index
    %c0_3 = arith.constant 0 : index
    %2 = vector.load %arg2[%c0_2, %c0_3] : memref<36x32xbf16, #tpu.memory_space<vmem>>, vector<36x32xbf16>
    %cst = arith.constant dense<0.000000e+00> : vector<256x32xf32>
    %3 = tpu.matmul %1, %2, %cst {dimension_numbers = #tpu.dot_dimension_numbers<[1], [0], [0], [1], [0, 0, 1, 1], [], []>} : vector<256x36xbf16>, vector<36x32xbf16>, vector<256x32xf32> -> vector<256x32xf32>
    %cst_4 = arith.constant 0.000000e+00 : f32
    %4 = vector.broadcast %cst_4 : f32 to vector<256x32xf32>
    %5 = arith.maximumf %3, %4 : vector<256x32xf32>
    %cst_5 = arith.constant dense<0.000000e+00> : vector<32xf32>
    %6 = vector.multi_reduction <add>, %5, %cst_5 [0] : vector<256x32xf32> to vector<32xf32>
    %7 = vector.shape_cast %6 : vector<32xf32> to vector<1x32xf32>
    %cst_6 = arith.constant 3.906250e-03 : f32
    %8 = vector.broadcast %cst_6 : f32 to vector<1x32xf32>
    %9 = arith.mulf %7, %8 : vector<1x32xf32>
    %cst_7 = arith.constant dense<0xFF800000> : vector<32xf32>
    %10 = vector.multi_reduction <maximumf>, %5, %cst_7 [0] : vector<256x32xf32> to vector<32xf32>
    %11 = vector.shape_cast %10 : vector<32xf32> to vector<1x32xf32>
    %12 = tpu.concatenate %9, %11 in 1 : vector<1x32xf32>, vector<1x32xf32> -> vector<1x64xf32>
    %13 = arith.truncf %12 : vector<1x64xf32> to vector<1x64xbf16>
    %c0_8 = arith.constant 0 : index
    %c0_9 = arith.constant 0 : index
    %14 = vector.load %arg3[%c0_8, %c0_9] : memref<64x6xbf16, #tpu.memory_space<vmem>>, vector<64x6xbf16>
    %cst_10 = arith.constant dense<0.000000e+00> : vector<1x6xf32>
    %15 = tpu.matmul %13, %14, %cst_10 {dimension_numbers = #tpu.dot_dimension_numbers<[1], [0], [0], [1], [0, 0, 1, 1], [], []>} : vector<1x64xbf16>, vector<64x6xbf16>, vector<1x6xf32> -> vector<1x6xf32>
    %c0_11 = arith.constant 0 : index
    %c0_12 = arith.constant 0 : index
    %c0_13 = arith.constant 0 : index
    %16 = vector.load %arg4[%c0_11, %c0_12, %c0_13] : memref<1x1x6xf32, #tpu.memory_space<vmem>>, vector<1x1x6xf32>
    %17 = vector.shape_cast %16 : vector<1x1x6xf32> to vector<1x6xf32>
    %18 = vector.shape_cast %15 : vector<1x6xf32> to vector<1x1x6xf32>
    tpu.vector_store %arg4[%c0_11, %c0_12, %c0_13], %18 {strides = array<i32>} : memref<1x1x6xf32, #tpu.memory_space<vmem>>, vector<1x1x6xf32>,
    return
  }
  func.func @transform_0(%arg0: i32) -> (i32, i32, i32) {
    %c0_i32 = arith.constant 0 : i32
    %c0_i32_0 = arith.constant 0 : i32
    %c0_i32_1 = arith.constant 0 : i32
    return %arg0, %c0_i32, %c0_i32_0 : i32, i32, i32
  }
  func.func @transform_1(%arg0: i32) -> (i32, i32) {
    %c0_i32 = arith.constant 0 : i32
    %c0_i32_0 = arith.constant 0 : i32
    %c0_i32_1 = arith.constant 0 : i32
    return %c0_i32, %c0_i32_0 : i32, i32
  }
  func.func @transform_2(%arg0: i32) -> (i32, i32) {
    %c0_i32 = arith.constant 0 : i32
    %c0_i32_0 = arith.constant 0 : i32
    %c0_i32_1 = arith.constant 0 : i32
    return %c0_i32, %c0_i32_0 : i32, i32
  }
  func.func @transform_3(%arg0: i32) -> (i32, i32, i32) {
    %c0_i32 = arith.constant 0 : i32
    %c0_i32_0 = arith.constant 0 : i32
    %c0_i32_1 = arith.constant 0 : i32
    return %arg0, %c0_i32, %c0_i32_0 : i32, i32, i32
  }
}

</mosaic_0001>

<bundles_post_ra>
// kernel: tpu_custom_call.1
= control target key start
LH: loop header
LB: loop body
LE: loop exit
PB: predicated region body
PF: predicated region fallthrough
CT: control target
= control target key end

     0   :  { %8 = vsyncpa [#allocation3], 0  ;;  %s1418_s0 = inlined_call_operand.vmem [shape: bf16[2,256,36], index: 0, kind: input, shape index: {}]   ;;  %s1419_s1 = inlined_call_operand.vmem [shape: bf16[36,32], index: 1, kind: input, shape index: {}]   ;;  %s1420_s2 = inlined_call_operand.vmem [shape: bf16[64,6], index: 2, kind: input, shape index: {}]   ;;  %s1421_s3 = inlined_call_operand.hbm [shape: f32[2,1,6], index: 3, kind: output, shape index: {}]  }
   0x1   :  { %10 = vsyncpa [#allocation3 + $0x1], 0  ;;  %s1122_s12 = smov 0   ;;  %s1124_s13 = smov 0  }
   0x2   :  { %s1126_s14 = smov 0   ;;  %s1128_s15 = smov 0  }
   0x3 LB: > { %s1143_s16 = sadd.s32 4294967295, %s1096_s15   ;;  %s839_s17 = sadd.s32 4294967294, %s1096_s15   ;;  %s1096_s15 = sphi %s1128_s15, %s1427_s15   ;;  %s1092_s14 = sphi %s1126_s14, %s1426_s14   ;;  %s1088_s13 = sphi %s1124_s13, %s1425_s13   ;;  %s1084_s12 = sphi %s1122_s12, %s1424_s12  }
   0x4   : > { %s1147_s18 = sadd.s32 1, %s1096_s15   ;;  %s91_s19 = sadd.s32 1, %s1092_s14 }
   0x5   : > { %s88_s20 = ssub.s32 %s1096_s15, %s1147_s18  ;;  %p101_p0 = scmp.ne.s32.totalorder %s1092_s14, %s1088_s13 }
   0x6   : > { %p89_p1 = scmp.eq.s32.totalorder %s88_s20, 0  ;;  %p102_p2 = scmp.eq.s32.totalorder %s1143_s16, 1 }
   0x7   : > { %p107_p3 = scmp.ne.s32.totalorder %s1088_s13, %s1084_s12  ;;  %p108_p4 = scmp.eq.s32.totalorder %s839_s17, 1 }
   0x8   : > { %s1158_s21 = scalar_select %p89_p1, %s1092_s14, %s91_s19  }
   0x9   : > { %p1160_p5 = por %p102_p2, %p101_p0  ;;  %p1164_p6 = por %p108_p4, %p107_p3 }
   0xa   : > { %p842_p7 = scmp.ge.s32.totalorder %s1096_s15, 1  ;;  %p140_p8 = scmp.lt.s32.totalorder %s1096_s15, 3 }
   0xc   : > { %p141_p9 = pnand %p842_p7, %p140_p8 }
   0xd   : > { %p163_p10 = scmp.lt.s32.totalorder (!%p141_p9), %s1143_s16, 1  ;;  %s1100_s25 = smov (!%p141_p9), 32  }
   0xe   : > { %144 = sbr.rel (%p141_p9) target bundleno = 617 (0x269), region = 32  ;;  %s161_s26 = sand.u32 (!%p141_p9), 1, %s1088_s13  }
   0xf   : > { %s885_s27 = sshll.u32 (!%p141_p9), %s1143_s16, 4  ;;  %s162_s28 = scalar_lea.vmem (!%p141_p9), [#allocation2], %s161_s26 }
  0x10   : > { %s784_s29 = sshll.u32 (!%p141_p9), %s162_s28, 4  ;;  %s1377_s5 = scalar_lea.hbm (!%p141_p9), %s1421_s3, %s885_s27  ;;  %s1379_s29 = int_to_ptr.vmem [resolvable:$true] %s784_s29 }
  0x11   : > { %s772_s6 = scalar_lea.sflag (!%p141_p9), [#allocation3], %s161_s26 }
  0x13   : > { %v1013_v0 = vld [vmem:[%s1419_s1 + $0x10] ss:$0 sps:$4 sm:$0x33]   ;;  %vm350_vm0 = vcmask 1041408   ;;  %v1014_v1 = vld [vmem:[%s1419_s1 + $0x8] sm:$0xff]   ;;  %v1015_v3 = vld [vmem:[%s1419_s1] sm:$0xff]  }
  0x14   : > { %969 = vmatprep.subr.msk.bf16.mxu0 %vm350_vm0, %v1013_v0  ;;  %v352_v2 = vsel %vm350_vm0, %v1013_v0, 0  ;;  %970 = vmatprep.subr.msk.bf16.mxu1 %vm350_vm0, %v1013_v0  ;;  %s164_s30 = scalar_select %p163_p10, %s1143_s16, 1  ;;  %vm301_vm1 = vcmask 293888   ;;  %v1032_v20 = vld [vmem:[%s1420_s2 + $0x18] sm:$0xff]   ;;  %v1098_v21 = vmov 0.0   ;;  %v1033_v22 = vld [vmem:[%s1420_s2 + $0x10] sm:$0xff]  }
  0x15   : > { %914 = vmatpush3.bf16.msra.mxu0 %v352_v2  ;;  %966 = vmatpush3.bf16.msra.mxu1 %v352_v2  ;;  %v1034_v23 = vld [vmem:[%s1420_s2 + $0x8] sm:$0xff]   ;;  %v1035_v24 = vld [vmem:[%s1420_s2] sm:$0xff]   ;;  %vm547_vm2 = vcmask 261120   ;;  %vm1099_vm3 = vmmov 0   ;;  %vm725_vm4 = vcmask 523264   ;;  %vm769_vm5 = vcmask 40960  }
  0x16   : > { %915 = vmatprep.subr.bf16.mxu0 %v1014_v1  ;;  %964 = vmatprep.subr.bf16.mxu1 %v1014_v1  ;;  %s888_s4 = sshll.u32 %s164_s30, 7  ;;  %s1101_s16 = smov [#allocation2]  }
  0x17   : > { %s1184_s7 = scalar_lea.vmem %s1418_s0, %s888_s4  ;;  %s1040_s8 = sshll.u32 %s1101_s16, 4  ;;  %s1041_s8 = int_to_ptr.vmem [resolvable:$false] %s1040_s8 }
  0x18   : > { %v1016_v4 = vld [vmem:[%s1184_s7] sm:$0xff]   ;;  %v1017_v5 = vld [vmem:[%s1184_s7 + $0x8] sm:$0xff]   ;;  %v1018_v6 = vld [vmem:[%s1184_s7 + $0x10] sm:$0xff]   ;;  %s1042_s9 = scalar_lea.vmem %s1041_s8, 32  ;;  %p1043_p0 = scmp.lt.s32.totalorder %s1379_s29, %s1041_s8 }
  0x19   : > { %916 = vmatpush3.bf16.msra.mxu0 %v1014_v1  ;;  %967 = vmatpush3.bf16.msra.mxu1 %v1014_v1  ;;  %v1021_v7 = vld [vmem:[%s1184_s7 + $0x50] sm:$0xff]   ;;  %v1023_v8 = vld [vmem:[%s1184_s7 + $0x58] sm:$0xff]   ;;  %v1025_v9 = vld [vmem:[%s1184_s7 + $0x60] sm:$0xff]  }
  0x1a   : > { %917 = vmatprep.subr.bf16.mxu0 %v1015_v3  ;;  %965 = vmatprep.subr.bf16.mxu1 %v1015_v3  ;;  %v1019_v10 = vld [vmem:[%s1184_s7 + $0x18] sm:$0xff]   ;;  %v1020_v11 = vld [vmem:[%s1184_s7 + $0x20] sm:$0xff]   ;;  %v1027_v12 = vld [vmem:[%s1184_s7 + $0x68] sm:$0xff]  }
  0x1b   : > { %919 = vmatprep.mubr.msk.bf16.mxu0 %vm301_vm1, %v1016_v4  ;;  %939 = vmatprep.mubr.msk.bf16.mxu1 %vm301_vm1, %v1021_v7  ;;  %v1029_v13 = vld [vmem:[%s1184_s7 + $0x70] sm:$0xff]   ;;  %v1022_v14 = vld [vmem:[%s1184_s7 + $0x28] sm:$0xff]   ;;  %v1031_v16 = vld [vmem:[%s1184_s7 + $0x78] sm:$0xff]  }
  0x1c   : > { %v1024_v15 = vld [vmem:[%s1184_s7 + $0x30] sm:$0xff]   ;;  %v1026_v17 = vld [vmem:[%s1184_s7 + $0x38] sm:$0xff]   ;;  %v1028_v18 = vld [vmem:[%s1184_s7 + $0x40] sm:$0xff]  }
  0x1d   : > { %918 = vmatpush3.bf16.msra.mxu0 %v1015_v3  ;;  %968 = vmatpush3.bf16.msra.mxu1 %v1015_v3  ;;  %v1030_v19 = vld [vmem:[%s1184_s7 + $0x48] sm:$0xff]   ;;  %s1036_s7 = scalar_lea.vmem %s1379_s29, 16 }
  0x1e   : > { %951 = vmatprep.subr.bf16.mxu1 %v1098_v21  ;;  %p1037_p11 = scmp.ne.s32.totalorder %s1379_s29, %s1036_s7  ;;  %p1044_p1 = scmp.lt.s32.totalorder %s1042_s9, %s1036_s7 }
  0x20   : > { %920 = vmatmul.mubr.msk.bf16.vlgmr.msra.gmra.mxu0 %vm301_vm1, %v1017_v5  ;;  %940 = vmatmul.mubr.msk.bf16.vlgmr.msra.gmra.mxu1 %vm301_vm1, %v1023_v8  ;;  %p1038_p12 = pnand %p1037_p11, %p1160_p5  ;;  %p1045_p2 = por %p1044_p1, %p1043_p0 }
  0x21   : > { %923 = vmatprep.mubr.msk.bf16.mxu0 %vm301_vm1, %v1018_v6  ;;  %943 = vmatprep.mubr.msk.bf16.mxu1 %vm301_vm1, %v1025_v9 }
  0x22   : > { %952 = vmatpush3.bf16.msra.mxu1 %v1032_v20  ;;  %p1039_p13 = pneg %p1038_p12 }
  0x23   : > { %953 = vmatprep.subr.bf16.mxu1 %v1098_v21 }
  0x24   : > { %p1046_p3 = pnand %p1045_p2, %p1039_p13 }
  0x26   : > { %954 = vmatpush3.bf16.msra.mxu1 %v1033_v22 }
  0x27   : > { %955 = vmatprep.subr.bf16.mxu1 %v1098_v21 }
  0x28   : > { %924 = vmatmul.mubr.msk.bf16.gmra.mxu0 %vm301_vm1, %v1019_v10  ;;  %944 = vmatmul.mubr.msk.bf16.gmra.mxu1 %vm301_vm1, %v1027_v12 }
  0x29   : > { %927 = vmatprep.mubr.msk.bf16.mxu0 %vm301_vm1, %v1020_v11  ;;  %947 = vmatprep.mubr.msk.bf16.mxu1 %vm301_vm1, %v1029_v13 }
  0x2a   : > { %956 = vmatpush3.bf16.msra.mxu1 %v1034_v23 }
  0x2b   : > { %957 = vmatprep.subr.bf16.mxu1 %v1098_v21 }
  0x2e   : > { %958 = vmatpush3.bf16.msra.mxu1 %v1035_v24 }
  0x30   : > { %928 = vmatmul.mubr.msk.bf16.gmra.mxu0 %vm301_vm1, %v1022_v14  ;;  %948 = vmatmul.mubr.msk.bf16.gmra.mxu1 %vm301_vm1, %v1031_v16 }
  0x31   : > { %931 = vmatprep.mubr.msk.bf16.mxu0 %vm301_vm1, %v1024_v15  ;;  %959 = vmatprep.mubr.msk.bf16.mxu1 %vm1099_vm3, %v1098_v21 }
  0x38   : > { %932 = vmatmul.mubr.msk.bf16.gmra.mxu0 %vm301_vm1, %v1026_v17 }
  0x39   : > { %935 = vmatprep.mubr.msk.bf16.mxu0 %vm301_vm1, %v1028_v18 }
  0x40   : > { %936 = vmatmul.mubr.msk.bf16.gmra.mxu0 %vm301_vm1, %v1030_v19 }
  0xe0   : > { %v921_v25 = vpop.f32.mrf.mxu0  ;;  %v1234_v27 = vpop.f32.mrf.mxu1 }
  0xe1   : > { %v517_v33 = vmax.f32 %v921_v25, 0.0  ;;  %v537_v63 = vmax.f32 %v1234_v27, 0.0 }
  0xe2   : > { %v388_v26 = vpop.f32.mrf.mxu0  ;;  %v1236_v29 = vpop.f32.mrf.mxu1 }
  0xe3   : > { %v515_v30 = vmax.f32 %v388_v26, 0.0  ;;  %v551_v42 = vsel %vm547_vm2, %v517_v33, 0.0  ;;  %v535_v2 = vmax.f32 %v1236_v29, 0.0  ;;  %v620_v4 = vsel %vm547_vm2, %v517_v33, -inf }
  0xe4   : > { %v922_v28 = vpop.f32.mrf.mxu0  ;;  %v1238_v32 = vpop.f32.mrf.mxu1  ;;  %v1266_v13 = vsel %vm547_vm2, %v537_v63, -inf  ;;  %v591_v29 = vsel %vm547_vm2, %v537_v63, 0.0 }
  0xe5   : > { %v548_v36 = vsel %vm547_vm2, %v515_v30, 0.0  ;;  %v518_v37 = vmax.f32 %v922_v28, 0.0  ;;  %v618_v5 = vsel %vm547_vm2, %v515_v30, -inf  ;;  %v538_v10 = vmax.f32 %v1238_v32, 0.0 }
  0xe6   : > { %v391_v31 = vpop.f32.mrf.mxu0  ;;  %v1242_v39 = vpop.f32.mrf.mxu1  ;;  %v1273_v18 = vsel %vm547_vm2, %v535_v2, -inf }
  0xe7   : > { %v516_v34 = vmax.f32 %v391_v31, 0.0  ;;  %v553_v46 = vsel %vm547_vm2, %v518_v37, 0.0  ;;  %v621_v12 = vsel %vm547_vm2, %v518_v37, -inf  ;;  %v536_v15 = vmax.f32 %v1242_v39, 0.0 }
  0xe8   : > { %v925_v35 = vpop.f32.mrf.mxu0  ;;  %v1246_v47 = vpop.f32.mrf.mxu1  ;;  %v1286_v33 = vsel %vm547_vm2, %v538_v10, -inf }
  0xe9   : > { %v549_v38 = vsel %vm547_vm2, %v516_v34, 0.0  ;;  %v521_v50 = vmax.f32 %v925_v35, 0.0  ;;  %v619_v23 = vsel %vm547_vm2, %v516_v34, -inf  ;;  %v541_v26 = vmax.f32 %v1246_v47, 0.0 }
  0xea   : > { %v550_v40 = vadd.f32 %v549_v38, %v548_v36  ;;  %v404_v41 = vpop.f32.mrf.mxu0  ;;  %v1250_v57 = vpop.f32.mrf.mxu1  ;;  %v1291_v34 = vsel %vm547_vm2, %v536_v15, -inf }
  0xeb   : > { %v519_v43 = vmax.f32 %v404_v41, 0.0  ;;  %v559_v60 = vsel %vm547_vm2, %v521_v50, 0.0  ;;  %v626_v17 = vsel %vm547_vm2, %v521_v50, -inf  ;;  %v539_v50 = vmax.f32 %v1250_v57, 0.0 }
  0xec   : > { %v552_v44 = vadd.f32 %v551_v42, %v550_v40  ;;  %v926_v45 = vpop.f32.mrf.mxu0  ;;  %v1256_v3 = vpop.f32.mrf.mxu1  ;;  %v627_v36 = vmax.f32 %v620_v4, %v626_v17  ;;  %v599_v32 = vsel %vm547_vm2, %v541_v26, 0.0 }
  0xed   : > { %v555_v51 = vsel %vm547_vm2, %v519_v43, 0.0  ;;  %v522_v55 = vmax.f32 %v926_v45, 0.0  ;;  %v622_v24 = vsel %vm547_vm2, %v519_v43, -inf  ;;  %v595_v39 = vsel %vm547_vm2, %v539_v50, 0.0 }
  0xee   : > { %v554_v48 = vadd.f32 %v553_v46, %v552_v44  ;;  %v407_v49 = vpop.f32.mrf.mxu0  ;;  %v1276_v22 = vpop.f32.mrf.mxu1  ;;  %v623_v41 = vmax.f32 %v618_v5, %v622_v24 }
  0xef   : > { %v520_v52 = vmax.f32 %v407_v49, 0.0  ;;  %v561_v1 = vsel %vm547_vm2, %v522_v55, 0.0  ;;  %v628_v30 = vsel %vm547_vm2, %v522_v55, -inf }
  0xf0   : > { %v556_v53 = vadd.f32 %v555_v51, %v554_v48  ;;  %v929_v54 = vpop.f32.mrf.mxu0  ;;  %v1296_v45 = vpop.f32.mrf.mxu1  ;;  %v629_v46 = vmax.f32 %v621_v12, %v628_v30  ;;  %v1301_v48 = vsel %vm547_vm2, %v541_v26, -inf }
  0xf1   : > { %v557_v56 = vsel %vm547_vm2, %v520_v52, 0.0  ;;  %v525_v8 = vmax.f32 %v929_v54, 0.0  ;;  %v624_v42 = vsel %vm547_vm2, %v520_v52, -inf }
  0xf2   : > { %v558_v58 = vadd.f32 %v557_v56, %v556_v53  ;;  %v420_v59 = vpop.f32.mrf.mxu0  ;;  %v625_v56 = vmax.f32 %v619_v23, %v624_v42 }
  0xf3   : > { %v523_v61 = vmax.f32 %v420_v59, 0.0  ;;  %v567_v31 = vsel %vm547_vm2, %v525_v8, 0.0  ;;  %v634_v43 = vsel %vm547_vm2, %v525_v8, -inf }
  0xf4   : > { %v560_v62 = vadd.f32 %v559_v60, %v558_v58  ;;  %v930_v0 = vpop.f32.mrf.mxu0  ;;  %v635_v58 = vmax.f32 %v627_v36, %v634_v43  ;;  %v542_v43 = vmax.f32 %v1256_v3, 0.0  ;;  %v545_v3 = vmax.f32 %v1296_v45, 0.0 }
  0xf5   : > { %v563_v9 = vsel %vm547_vm2, %v523_v61, 0.0  ;;  %v526_v19 = vmax.f32 %v930_v0, 0.0  ;;  %v630_v53 = vsel %vm547_vm2, %v523_v61, -inf }
  0xf6   : > { %v562_v6 = vadd.f32 %v561_v1, %v560_v62  ;;  %v423_v7 = vpop.f32.mrf.mxu0  ;;  %v631_v61 = vmax.f32 %v623_v41, %v630_v53  ;;  %v540_v53 = vmax.f32 %v1276_v22, 0.0  ;;  %v662_v22 = vsel %vm547_vm2, %v539_v50, -inf }
  0xf7   : > { %v524_v11 = vmax.f32 %v423_v7, 0.0  ;;  %v569_v44 = vsel %vm547_vm2, %v526_v19, 0.0  ;;  %v636_v0 = vsel %vm547_vm2, %v526_v19, -inf }
  0xf8   : > { %v564_v14 = vadd.f32 %v563_v9, %v562_v6  ;;  %v933_v16 = vpop.f32.mrf.mxu0  ;;  %v1310_v6 = vpop.f32.mrf.mxu1  ;;  %v597_v27 = vsel %vm547_vm2, %v540_v53, 0.0 }
  0xf9   : > { %v565_v20 = vsel %vm547_vm2, %v524_v11, 0.0  ;;  %v529_v38 = vmax.f32 %v933_v16, 0.0  ;;  %v632_v7 = vsel %vm547_vm2, %v524_v11, -inf }
  0xfa   : > { %v566_v25 = vadd.f32 %v565_v20, %v564_v14  ;;  %v436_v28 = vpop.f32.mrf.mxu0  ;;  %v637_v20 = vmax.f32 %v629_v46, %v636_v0  ;;  %v1319_v36 = vpop.f32.mrf.mxu1 }
  0xfb   : > { %v527_v35 = vmax.f32 %v436_v28, 0.0  ;;  %v642_v59 = vsel %vm547_vm2, %v529_v38, -inf  ;;  %v575_v8 = vsel %vm547_vm2, %v529_v38, 0.0  ;;  %v546_v0 = vmax.f32 %v1319_v36, 0.0 }
  0xfc   : > { %v568_v37 = vadd.f32 %v567_v31, %v566_v25  ;;  %v934_v40 = vpop.f32.mrf.mxu0  ;;  %v643_v14 = vmax.f32 %v635_v58, %v642_v59 }
  0xfd   : > { %v571_v52 = vsel %vm547_vm2, %v527_v35, 0.0  ;;  %v530_v54 = vmax.f32 %v934_v40, 0.0  ;;  %v638_v1 = vsel %vm547_vm2, %v527_v35, -inf  ;;  %v609_v26 = vsel %vm547_vm2, %v546_v0, 0.0 }
  0xfe   : > { %v570_v49 = vadd.f32 %v569_v44, %v568_v37  ;;  %v439_v51 = vpop.f32.mrf.mxu0  ;;  %v639_v23 = vmax.f32 %v631_v61, %v638_v1  ;;  %v633_v37 = vmax.f32 %v625_v56, %v632_v7  ;;  %v543_v61 = vmax.f32 %v1310_v6, 0.0 }
  0xff   : > { %v528_v55 = vmax.f32 %v439_v51, 0.0  ;;  %v644_v16 = vsel %vm547_vm2, %v530_v54, -inf  ;;  %v577_v24 = vsel %vm547_vm2, %v530_v54, 0.0  ;;  %v587_v6 = vsel %vm547_vm2, %v535_v2, 0.0 }
 0x100   : > { %v572_v60 = vadd.f32 %v571_v52, %v570_v49  ;;  %v937_v62 = vpop.f32.mrf.mxu0  ;;  %v645_v38 = vmax.f32 %v637_v20, %v644_v16  ;;  %v664_v16 = vsel %vm547_vm2, %v540_v53, -inf  ;;  %v603_v50 = vsel %vm547_vm2, %v543_v61, 0.0 }
 0x101   : > { %v573_v4 = vsel %vm547_vm2, %v528_v55, 0.0  ;;  %v533_v5 = vmax.f32 %v937_v62, 0.0  ;;  %v640_v30 = vsel %vm547_vm2, %v528_v55, -inf }
 0x102   : > { %v574_v9 = vadd.f32 %v573_v4, %v572_v60  ;;  %v452_v12 = vpop.f32.mrf.mxu0  ;;  %v641_v51 = vmax.f32 %v633_v37, %v640_v30  ;;  %v503_v60 = vpop.f32.mrf.mxu1  ;;  %v593_v37 = vsel %vm547_vm2, %v538_v10, 0.0 }
 0x103   : > { %v650_v17 = vsel %vm547_vm2, %v533_v5, -inf  ;;  %v531_v19 = vmax.f32 %v452_v12, 0.0 }
 0x104   : > { %v576_v25 = vadd.f32 %v575_v8, %v574_v9  ;;  %v938_v28 = vpop.f32.mrf.mxu0  ;;  %v651_v31 = vmax.f32 %v643_v14, %v650_v17  ;;  %v544_v9 = vmax.f32 %v503_v60, 0.0  ;;  %v674_v17 = vsel %vm547_vm2, %v545_v3, -inf }
 0x105   : > { %v646_v11 = vsel %vm547_vm2, %v531_v19, -inf  ;;  %v534_v35 = vmax.f32 %v938_v28, 0.0  ;;  %v579_v44 = vsel %vm547_vm2, %v531_v19, 0.0  ;;  %v676_v19 = vsel %vm547_vm2, %v546_v0, -inf }
 0x106   : > { %v578_v40 = vadd.f32 %v577_v24, %v576_v25  ;;  %v647_v41 = vmax.f32 %v639_v23, %v646_v11  ;;  %v455_v42 = vpop.f32.mrf.mxu0  ;;  %v659_v55 = vmax.f32 %v651_v31, %v1266_v13  ;;  %v668_v13 = vsel %vm547_vm2, %v542_v43, -inf }
 0x107   : > { %v652_v46 = vsel %vm547_vm2, %v534_v35, -inf  ;;  %v532_v49 = vmax.f32 %v455_v42, 0.0  ;;  %v585_v12 = vsel %vm547_vm2, %v534_v35, 0.0  ;;  %v672_v25 = vsel %vm547_vm2, %v544_v9, -inf }
 0x108   : > { %v580_v52 = vadd.f32 %v579_v44, %v578_v40  ;;  %v653_v54 = vmax.f32 %v645_v38, %v652_v46  ;;  %v655_v56 = vmax.f32 %v647_v41, %v1273_v18  ;;  %v583_v18 = vsel %vm547_vm2, %v533_v5, 0.0 }
 0x109   : > { %v581_v58 = vsel %vm547_vm2, %v532_v49, 0.0  ;;  %v648_v59 = vsel %vm547_vm2, %v532_v49, -inf  ;;  %v667_v45 = vmax.f32 %v659_v55, %v1301_v48  ;;  %v670_v48 = vsel %vm547_vm2, %v543_v61, -inf }
 0x10a   : > { %v661_v62 = vmax.f32 %v653_v54, %v1286_v33  ;;  %v582_v1 = vadd.f32 %v581_v58, %v580_v52  ;;  %v649_v4 = vmax.f32 %v641_v51, %v648_v59  ;;  %v663_v33 = vmax.f32 %v655_v56, %v662_v22 }
 0x10b   : > { %v675_v28 = vmax.f32 %v667_v45, %v674_v17  ;;  %v601_v46 = vsel %vm547_vm2, %v542_v43, 0.0  ;;  %v605_v21 = vsel %vm547_vm2, %v544_v9, 0.0  ;;  %v607_v55 = vsel %vm547_vm2, %v545_v3, 0.0 }
 0x10c   : > { %v669_v7 = vmax.f32 %v661_v62, %v668_v13  ;;  %v584_v8 = vadd.f32 %v583_v18, %v582_v1  ;;  %v657_v14 = vmax.f32 %v649_v4, %v1291_v34  ;;  %v589_v34 = vsel %vm547_vm2, %v536_v15, 0.0 }
 0x10d   : > { %v671_v30 = vmax.f32 %v663_v33, %v670_v48 }
 0x10e   : > { %v586_v5 = vadd.f32 %v585_v12, %v584_v8  ;;  %v677_v20 = vmax.f32 %v669_v7, %v676_v19  ;;  %v665_v23 = vmax.f32 %v657_v14, %v664_v16 }
 0x110   : > { %v588_v24 = vadd.f32 %v587_v6, %v586_v5  ;;  %v673_v31 = vmax.f32 %v665_v23, %v672_v25  ;;  %v679_v2 = vmax.f32 %v675_v28, %v677_v20 }
 0x112   : > { %v590_v11 = vadd.f32 %v589_v34, %v588_v24  ;;  %v678_v35 = vmax.f32 %v671_v30, %v673_v31 }
 0x114   : > { %v592_v36 = vadd.f32 %v591_v29, %v590_v11  ;;  %v680_v38 = vmax.f32 %v678_v35, %v679_v2 }
 0x116   : > { %v594_v40 = vadd.f32 %v593_v37, %v592_v36  ;;  %v681_v15 = vrot.slane %v680_v38, 4 }
 0x118   : > { %v596_v41 = vadd.f32 %v595_v39, %v594_v40  ;;  %v682_v63 = vmax.f32 %v680_v38, %v681_v15 }
 0x11a   : > { %v598_v42 = vadd.f32 %v597_v27, %v596_v41  ;;  %v683_v10 = vrot.slane %v682_v63, 2 }
 0x11c   : > { %v600_v44 = vadd.f32 %v599_v32, %v598_v42  ;;  %v684_v57 = vmax.f32 %v682_v63, %v683_v10 }
 0x11e   : > { %v602_v49 = vadd.f32 %v601_v46, %v600_v44  ;;  %v685_v51 = vrot.slane %v684_v57, 1 }
 0x120   : > { %v604_v52 = vadd.f32 %v603_v50, %v602_v49  ;;  %v686_v54 = vmax.f32 %v684_v57, %v685_v51 }
 0x122   : > { %v606_v53 = vadd.f32 %v605_v21, %v604_v52  ;;  %688 = vrot.lane.b32.xlu0 %v686_v54, %s1100_s25 }
 0x124   : > { %v608_v47 = vadd.f32 %v607_v55, %v606_v53 }
 0x126   : > { %v610_v43 = vadd.f32 %v609_v26, %v608_v47 }
 0x128   : > { %v611_v56 = vrot.slane %v610_v43, 4 }
 0x12a   : > { %v612_v58 = vadd.f32 %v611_v56, %v610_v43 }
 0x12c   : > { %v613_v59 = vrot.slane %v612_v58, 2 }
 0x12e   : > { %v614_v60 = vadd.f32 %v613_v59, %v612_v58 }
 0x130   : > { %v615_v62 = vrot.slane %v614_v60, 1 }
 0x132   : > { %v616_v1 = vadd.f32 %v615_v62, %v614_v60 }
 0x134   : > { %v617_v22 = vmul.f32 0.00390625, %v616_v1 }
 0x194   : > { %v689_v13 = vpop.permute.xlu0 %688 }
 0x195   : > { %v691_v18 = vsel %vm547_vm2, %v617_v22, %v689_v13 }
 0x196   : > { %v692_v3 = vpack.c.bf16 %v691_v18, %v691_v18 }
 0x198   : > { %960 = vmatmul.mubr.msk.bf16.vlgmr.msra.gmra.mxu1 %vm725_vm4, %v692_v3 }
 0x258   : > { %v763_v0 = vpop.f32.mrf.mxu1 }
 0x259   : > { %770 = vst.msk [vmem:[%s162_s28] sm:$0x1] %vm769_vm5, %v763_v0 }
 0x25a   : > { %v961_v4 = vpop.f32.mrf.mxu1 }
 0x25b   : > { %1049 = shalt.err (!%p1046_p3)
}
 0x25c   : > { %s1050_s10 = scalar_lea.hbm %s1377_s5, 16  ;;  %s1054_s19 = scalar_lea.hbm %s1421_s3, 32 }
 0x25d   : > { %p1051_p4 = scmp.ne.s32.totalorder %s1377_s5, %s1050_s10  ;;  %p1055_p9 = scmp.lt.s32.totalorder %s1377_s5, %s1421_s3 }
 0x25e   : > { %p1056_p10 = scmp.lt.s32.totalorder %s1054_s19, %s1050_s10 }
 0x25f   : > { %p1052_p7 = pnand %p1051_p4, %p1160_p5 }
 0x260   : > { %p1057_p11 = por %p1056_p10, %p1055_p9 }
 0x261   : > { %p1053_p8 = pneg %p1052_p7 }
 0x263   : > { %p1058_p12 = pnand %p1057_p11, %p1053_p8 }
 0x265   : > { %1061 = shalt.err (!%p1058_p12)
}
 0x266   : > { %971 = dma.vmem_to_hbm [thread:$0]  (%p1160_p5), %s1379_s29, 16, %s1377_s5, %s772_s6   ;;  %v766_v61 = vpop.f32.mrf.mxu1 }
 0x268   : > { %v962_v7 = vpop.f32.mrf.mxu1 }
 0x269 PF: > { %p977_p13 = scmp.ge.s32.totalorder %s1096_s15, 2  ;;  %s796_s25 = sand.u32 1, %s1084_s12  }
 0x26a   : > { %s797_s26 = scalar_lea.sflag [#allocation3], %s796_s25 }
 0x26b   : > { %p974_p0 = pnand %p977_p13, %p1164_p6 }
 0x26d   : > { %p975_p1 = pneg %p974_p0 }
 0x26f   : > { %1079 = dma.done.wait (%p975_p1), %s797_s26, 16  }
 0x270   : > { %1081 = vsyncadd (%p975_p1), %s797_s26, 4294967280  ;;  %p13_p5 = scmp.ge.s32.totalorder %s1147_s18, 4   ;;  %s1424_s12 = smov %s1088_s13 }
 0x271   : > { %s1425_s13 = smov %s1092_s14  ;;  %s1426_s14 = smov %s1158_s21 }
 0x272   : > { %s1427_s15 = smov %s1147_s18  ;;  %15 = sbr.rel (!%p13_p5) target bundleno = 3 (0x3), region = 67 }
 0x277   :  { %801 = vsyncpa [#allocation3], 1 }
 0x278   :  { %803 = vsyncpa [#allocation3 + $0x1], 1 }

</bundles_post_ra>
